<compile_context>
chip_gen: v7x
topology: tpu7x:2x2x1
jax: 0.10.0
libtpu: 0.0.40
codegen_flags: <defaults>
</compile_context>

<pallas_src>
import math

import jax
import jax.numpy as jnp
from jax import lax
from jax.experimental import pallas as pl
from jax.experimental.pallas import tpu as pltpu


def _matmul_kernel(x_ref, w_ref, o_ref):
    # One (tm, Cin) x (Cin, K*Cout_p) tile; the full Cin contraction ("reduce"
    # over input-channel shards) happens in a single MXU dot, f32 accumulation.
    o_ref[...] = jnp.dot(x_ref[...], w_ref[...],
                         preferred_element_type=jnp.float32).astype(o_ref.dtype)


def conv_transpose1d_pallas(x, weight, bias, stride, padding, output_padding,
                            dilation, groups=1, *, tm=512, compute_dtype=None):
    """ConvTranspose1d (groups=1, padding_mode='zeros') via a Pallas matmul.

    x:      (N, Cin, L)      NCL layout
    weight: (Cin, Cout, K)   ConvTranspose weight layout
    bias:   (Cout,) or None
    compute_dtype: set to jnp.bfloat16 on v6e/v7x to use the bf16 MXU path
                   (accumulation stays f32); default keeps the input dtype.
    """
    assert groups == 1, "grouped transposed conv not implemented"
    N, Cin, L = x.shape
    Cin_w, Cout, K = weight.shape
    assert Cin == Cin_w
    (s,), (p,), (op,), (d,) = stride, padding, output_padding, dilation
    L_out = (L - 1) * s - 2 * p + d * (K - 1) + 1 + op

    # lane-dense channel padding (per kernel tap)
    Cout_p = ((Cout + 127) // 128) * 128
    Np = K * Cout_p

    cdt = compute_dtype or x.dtype

    # LHS: (M, Cin) = the input itself, re-laid-out.  No im2col, no zeros.
    M = N * L
    A = jnp.transpose(x, (0, 2, 1)).reshape(M, Cin).astype(cdt)

    # RHS: (Cin, K*Cout_p); Wmat[c, k*Cout_p + o] = weight[c, o, k]
    Wmat = jnp.transpose(weight, (0, 2, 1))                    # (Cin, K, Cout)
    Wmat = jnp.pad(Wmat, ((0, 0), (0, 0), (0, Cout_p - Cout)))
    Wmat = Wmat.reshape(Cin, Np).astype(cdt)

    # M-tile: sublane-aligned; no HBM pad of A (partial last block is masked).
    tm_eff = min(tm, ((M + 7) // 8) * 8)
    grid = (pl.cdiv(M, tm_eff),)

    itemsize = jnp.dtype(cdt).itemsize
    vmem_bytes = 2 * (tm_eff * Cin + Cin * Np + tm_eff * Np) * itemsize + (2 << 20)
    vmem_limit = int(min(vmem_bytes, 60 << 20))
    # TODO(synk): tile the Cin contraction with a K grid axis + f32 VMEM
    # accumulator if (Cin * K * Cout_p) ever outgrows the VMEM budget.

    Z = pl.pallas_call(
        _matmul_kernel,
        out_shape=jax.ShapeDtypeStruct((M, Np), x.dtype),
        grid_spec=pltpu.PrefetchScalarGridSpec(
            num_scalar_prefetch=0,
            grid=grid,
            in_specs=[
                pl.BlockSpec((tm_eff, Cin), lambda i: (i, 0)),
                pl.BlockSpec((Cin, Np), lambda i: (0, 0)),     # VMEM-resident
            ],
            out_specs=pl.BlockSpec((tm_eff, Np), lambda i: (i, 0)),
        ),
        compiler_params=pltpu.CompilerParams(
            dimension_semantics=("parallel",),
            vmem_limit_bytes=vmem_limit),
    )(A, Wmat)

    # col2im: Z[n, i, k, :] contributes to (pre-crop) output position i*s + k*d.
    Z = Z.reshape(N, L, K, Cout_p)
    L_full = (L - 1) * s + d * (K - 1) + 1 + op
    y = jnp.zeros((N, L_full, Cout_p), Z.dtype)
    for k in range(K):
        y = y.at[:, k * d:k * d + (L - 1) * s + 1:s, :].add(Z[:, :, k, :])
    y = y[:, p:p + L_out, :Cout]               # crop conv padding + channel pad
    if bias is not None:
        y = y + bias.astype(y.dtype)[None, None, :]
    return jnp.transpose(y, (0, 2, 1))         # NLC -> NCL (module's layout)


class DistributedChannelReduceScatterConvTranspose1dPallas:
    """Single-partition (P_x = [1, 1, 1]) forward of the distdl layer."""

    def __init__(self, in_channels, out_channels, kernel_size, stride=1,
                 padding=0, output_padding=0, groups=1, bias=True, dilation=1,
                 key=None, dtype=jnp.float32):
        assert groups == 1  # TODO(synk): grouped transposed conv not implemented
        single = lambda v: (v,) if isinstance(v, int) else tuple(v)
        self.kernel_size = single(kernel_size)
        self.stride = single(stride)
        self.padding = single(padding)
        self.output_padding = single(output_padding)
        self.dilation = single(dilation)
        self.in_channels = in_channels
        self.out_channels = out_channels

        if key is None:
            key = jax.random.PRNGKey(0)
        kw, kb = jax.random.split(key)
        # ConvTranspose weight layout: (Cin, Cout // groups, K)
        wshape = (in_channels, out_channels // groups, *self.kernel_size)
        # kaiming_uniform_(a=sqrt(5)) == U(-1/sqrt(fan_in), 1/sqrt(fan_in)),
        # fan_in from the global weight tensor = shape[1] * prod(kernel_size)
        fan_in = wshape[1] * math.prod(self.kernel_size)
        bound = 1.0 / math.sqrt(fan_in)
        self.weight = jax.random.uniform(kw, wshape, dtype, -bound, bound)
        self.bias = (jax.random.uniform(kb, (out_channels,), dtype, -bound, bound)
                     if bias else None)

    def __call__(self, x):
        # broadcast_weight / broadcast_bias: identity on a single worker.
        y = conv_transpose1d_pallas(x, self.weight, self.bias, self.stride,
                                    self.padding, self.output_padding,
                                    self.dilation)
        # reduce_scatter over a channel partition of size 1: identity (the
        # cross-worker sum is realized by the Cin contraction in the matmul).
        return y


if __name__ == "__main__":
    key = jax.random.PRNGKey(0)
    kx, kp = jax.random.split(key)

    # reduce-scatter regime: in_channels > out_channels
    N, Cin, Cout, L = 2, 8, 4, 16
    x = jax.random.normal(kx, (N, Cin, L), jnp.float32)

    layer = DistributedChannelReduceScatterConvTranspose1dPallas(
        in_channels=Cin, out_channels=Cout, kernel_size=3, stride=2,
        padding=1, output_padding=1, dilation=1, bias=True, key=kp)

    y = jax.block_until_ready(layer(x))

    # reference: XLA's lhs-dilated conv expressing the same transposed conv
    (s,), (p,), (op,), (d,) = (layer.stride, layer.padding,
                               layer.output_padding, layer.dilation)
    (k,) = layer.kernel_size
    w_conv = jnp.transpose(jnp.flip(layer.weight, 2), (1, 0, 2))   # (Cout, Cin, K)
    ref = lax.conv_general_dilated(
        x, w_conv, window_strides=(1,),
        padding=[(d * (k - 1) - p, d * (k - 1) - p + op)],
        lhs_dilation=(s,), rhs_dilation=(d,),
        dimension_numbers=("NCH", "OIH", "NCH"),
    ) + layer.bias[None, :, None]

    L_out = (L - 1) * s - 2 * p + d * (k - 1) + 1 + op
    assert y.shape == (N, Cout, L_out), y.shape
    assert jnp.allclose(y, ref, atol=1e-4, rtol=1e-4), float(jnp.max(jnp.abs(y - ref)))
    print("KERNEL_OK")
</pallas_src>

<mosaic_0001>
module attributes {stable_mosaic.version = 11 : i64} {
  func.func @_matmul_kernel(%arg0: i32, %arg1: memref<32x8xf32, #tpu.memory_space<vmem>>, %arg2: memref<8x384xf32, #tpu.memory_space<vmem>>, %arg3: memref<32x384xf32, #tpu.memory_space<vmem>>) attributes {dimension_semantics = [#tpu.dimension_semantics<parallel>], iteration_bounds = array<i64: 1>, scalar_prefetch = 0 : i64, scratch_operands = 0 : i64, tpu.core_type = #tpu.core_type<tc>, window_params = [{transform_indices = @transform_0, window_bounds = array<i64: 32, 8>}, {pipeline_mode = #tpu.pipeline_mode<synchronous>, transform_indices = @transform_1, window_bounds = array<i64: 8, 384>}, {transform_indices = @transform_2, window_bounds = array<i64: 32, 384>}]} {
    %c0 = arith.constant 0 : index
    %c0_0 = arith.constant 0 : index
    %0 = vector.load %arg1[%c0, %c0_0] : memref<32x8xf32, #tpu.memory_space<vmem>>, vector<32x8xf32>
    %c0_1 = arith.constant 0 : index
    %c0_2 = arith.constant 0 : index
    %1 = vector.load %arg2[%c0_1, %c0_2] : memref<8x384xf32, #tpu.memory_space<vmem>>, vector<8x384xf32>
    %cst = arith.constant dense<0.000000e+00> : vector<32x384xf32>
    %2 = tpu.matmul %0, %1, %cst {dimension_numbers = #tpu.dot_dimension_numbers<[1], [0], [0], [1], [0, 0, 1, 1], [], []>} : vector<32x8xf32>, vector<8x384xf32>, vector<32x384xf32> -> vector<32x384xf32>
    %c0_3 = arith.constant 0 : index
    %c0_4 = arith.constant 0 : index
    %3 = vector.load %arg3[%c0_3, %c0_4] : memref<32x384xf32, #tpu.memory_space<vmem>>, vector<32x384xf32>
    tpu.vector_store %arg3[%c0_3, %c0_4], %2 {strides = array<i32>} : memref<32x384xf32, #tpu.memory_space<vmem>>, vector<32x384xf32>,
    return
  }
  func.func @transform_0(%arg0: i32) -> (i32, i32) {
    %c0_i32 = arith.constant 0 : i32
    %c0_i32_0 = arith.constant 0 : i32
    return %arg0, %c0_i32 : i32, i32
  }
  func.func @transform_1(%arg0: i32) -> (i32, i32) {
    %c0_i32 = arith.constant 0 : i32
    %c0_i32_0 = arith.constant 0 : i32
    %c0_i32_1 = arith.constant 0 : i32
    return %c0_i32, %c0_i32_0 : i32, i32
  }
  func.func @transform_2(%arg0: i32) -> (i32, i32) {
    %c0_i32 = arith.constant 0 : i32
    %c0_i32_0 = arith.constant 0 : i32
    return %arg0, %c0_i32 : i32, i32
  }
}

</mosaic_0001>

<bundles_post_ra>
// kernel: tpu_custom_call.1
= control target key start
LH: loop header
LB: loop body
LE: loop exit
PB: predicated region body
PF: predicated region fallthrough
CT: control target
= control target key end

     0   :  { %vm19_vm0 = vcmask 64512   ;;  %s345_s0 = inlined_call_operand.vmem [shape: f32[32,8], index: 0, kind: input, shape index: {}]   ;;  %s346_s1 = inlined_call_operand.vmem [shape: f32[8,384], index: 1, kind: input, shape index: {}]   ;;  %s347_s2 = inlined_call_operand.hbm [shape: f32[32,384], index: 2, kind: output, shape index: {}]  }
   0x1   :  { %v17_v0 = vld [vmem:[%s346_s1 + $0x8] sm:$0xff]  ;;  %v16_v1 = vld [vmem:[%s346_s1] sm:$0xff]  ;;  %v15_v3 = vld [vmem:[%s345_s0 + $0x18] sm:$0xff] }
   0x2   :  { %32 = vmatprep.subr.mxu0 %v17_v0  ;;  %255 = vmatprep.subr.mxu1 %v17_v0  ;;  %v12_v2 = vld [vmem:[%s345_s0] sm:$0xff]  ;;  %v18_v4 = vld [vmem:[%s346_s1 + $0x10] sm:$0xff] }
   0x3   :  { %33 = vmatpush1.msra.mxu0 %v16_v1  ;;  %256 = vmatpush1.msra.mxu1 %v16_v1 }
   0x4   :  { %7 = vsyncpa [#allocation3], 0  ;;  %v285_v5 = vmov 0.0   ;;  %247 = vmatprep.subr.mxu1 %v18_v4  ;;  %v13_v6 = vld [vmem:[%s345_s0 + $0x8] sm:$0xff]  ;;  %v14_v7 = vld [vmem:[%s345_s0 + $0x10] sm:$0xff]  ;;  %s286_s0 = smov [#allocation2]  }
   0x5   :  { %96 = vmatprep.mubr.f32.mxu0 %v285_v5  ;;  %114 = vmatprep.mubr.f32.mxu1 %v285_v5  ;;  %s223_s1 = sshll.u32 %s286_s0, 4  ;;  %s224_s1 = int_to_ptr.vmem [resolvable:$true] %s223_s1 }
   0x6   :  { %234 = vmatmul.mubr.msk.f32.vlgmr.msra.gmra.mrb[0].mxu0 %vm19_vm0, %v12_v2  ;;  %237 = vmatmul.mubr.msk.f32.vlgmr.msra.gmra.mrb[0].mxu1 %vm19_vm0, %v15_v3  ;;  %s261_s23 = scalar_lea.vmem %s224_s1, 1536  ;;  %p266_p1 = scmp.lt.s32.totalorder %s224_s1, %s224_s1 }
   0x7   :  { %102 = vmatprep.mubr.f32.mxu0 %v285_v5  ;;  %248 = vmatpush3.msra.mxu1 %v18_v4  ;;  %p262_p0 = scmp.ne.s32.totalorder %s224_s1, %s261_s23  ;;  %p267_p2 = scmp.lt.s32.totalorder %s261_s23, %s261_s23 }
   0x8   :  { %249 = vmatprep.mubr.msk.f32.mxu1 %vm19_vm0, %v12_v2 }
   0x9   :  { %p268_p3 = por %p267_p2, %p266_p1 }
   0xa   :  { %235 = vmatmul.mubr.msk.f32.gmra.mrb[2].mxu0 %vm19_vm0, %v13_v6  ;;  %250 = vmatmul.mubr.msk.f32.vlgmr.msra.gmra.mrb[2].mxu1 %vm19_vm0, %v13_v6 }
   0xb   :  { %108 = vmatprep.mubr.f32.mxu0 %v285_v5  ;;  %252 = vmatprep.mubr.msk.f32.mxu1 %vm19_vm0, %v14_v7  ;;  %p269_p4 = pnand %p268_p3, %p262_p0 }
   0xe   :  { %236 = vmatmul.mubr.msk.f32.gmra.mrb[4].mxu0 %vm19_vm0, %v14_v7  ;;  %253 = vmatmul.mubr.msk.f32.gmra.mrb[4].mxu1 %vm19_vm0, %v15_v3 }
  0xd9   :  { %v98_v8 = vpop.f32.mrb[0].mxu0  ;;  %v116_v9 = vpop.f32.mrb[0].mxu1 }
  0xda   :  { %206 = vst [vmem:[#allocation2] sm:$0xff] %v98_v8  ;;  %215 = vst [vmem:[#allocation2 + $0x48] sm:$0xff] %v116_v9  ;;  %v100_v10 = vpop.f32.mrb[1].mxu0  ;;  %v118_v11 = vpop.f32.mrb[1].mxu1 }
  0xdb   :  { %207 = vst [vmem:[#allocation2 + $0x8] sm:$0xff] %v100_v10  ;;  %216 = vst [vmem:[#allocation2 + $0x50] sm:$0xff] %v118_v11 }
  0xdd   :  { %v104_v12 = vpop.f32.mrb[2].mxu0  ;;  %v251_v13 = vpop.f32.mrb[2].mxu1 }
  0xde   :  { %209 = vst [vmem:[#allocation2 + $0x18] sm:$0xff] %v104_v12  ;;  %211 = vst [vmem:[#allocation2 + $0x28] sm:$0xff] %v251_v13  ;;  %v106_v14 = vpop.f32.mrb[3].mxu0  ;;  %v187_v15 = vpop.f32.mrb[3].mxu1 }
  0xdf   :  { %210 = vst [vmem:[#allocation2 + $0x20] sm:$0xff] %v106_v14  ;;  %208 = vst [vmem:[#allocation2 + $0x10] sm:$0xff] %v187_v15 }
  0xe1   :  { %v110_v16 = vpop.f32.mrb[4].mxu0  ;;  %v254_v17 = vpop.f32.mrb[4].mxu1 }
  0xe2   :  { %212 = vst [vmem:[#allocation2 + $0x30] sm:$0xff] %v110_v16  ;;  %217 = vst [vmem:[#allocation2 + $0x58] sm:$0xff] %v254_v17  ;;  %v112_v18 = vpop.f32.mrb[5].mxu0  ;;  %v197_v19 = vpop.f32.mrb[5].mxu1 }
  0xe3   :  { %213 = vst [vmem:[#allocation2 + $0x38] sm:$0xff] %v112_v18  ;;  %214 = vst [vmem:[#allocation2 + $0x40] sm:$0xff] %v197_v19 }
  0xe4   :  { %272 = shalt.err (!%p269_p4)
}
  0xe5   :  { %s273_s26 = scalar_lea.hbm %s347_s2, 1536 }
  0xe6   :  { %p274_p5 = scmp.ne.s32.totalorder %s347_s2, %s273_s26  ;;  %p277_p6 = scmp.lt.u32.totalorder %s273_s26, %s347_s2 }
  0xe8   :  { %p279_p7 = pnand %p277_p6, %p274_p5 }
  0xea   :  { %282 = shalt.err (!%p279_p7)
}
  0xeb   :  { %s287_s3 = smov 384   ;;  %s288_s4 = smov 24  }
  0xec   :  { %229 = dma.vmem_to_hbm [thread:$0]  %s224_s1, 1536, %s347_s2, [#allocation3], %s287_s3, %s287_s3, %s288_s4  }
  0xed   :  { %283 = dma.done.wait [#allocation3], 1536  }
  0xee   :  { %284 = vsyncadd [#allocation3], 4294965760 }
  0xef   :  { %233 = vsyncpa [#allocation3], 1 }

</bundles_post_ra>
